<compile_context>
chip_gen: v7x
topology: tpu7x:2x2x1
jax: 0.10.0
libtpu: 0.0.40
codegen_flags: <defaults>
</compile_context>

<pallas_src>
import jax
import jax.numpy as jnp
from jax.experimental import pallas as pl
from jax.experimental.pallas import tpu as pltpu


# Parameter packing layout inside the single SMEM buffer (17 f32 scalars):
#   [0:6)   w1, shape (3, 2), row-major   -> w1[j, k] at 2*j + k
#   [6:9)   b1, shape (3,)                -> b1[j]    at 6 + j
#   [9:15)  w2, shape (2, 3), row-major   -> w2[i, j] at 9 + 3*i + j
#   [15:17) b2, shape (2,)                -> b2[i]    at 15 + i
_N_PARAMS = 17


def _sigmoid(z):
    # sigmoid(z) = 0.5 * (1 + tanh(z / 2)): one EUP push per element, exact.
    return 0.5 * jnp.tanh(0.5 * z) + 0.5


def mlp_kernel(p_ref, x_ref, o_ref):
    # p_ref: SMEM (17,) f32
    # x_ref: VMEM (TR, 128) f32, lanes interleaved [x0, x1, x0, x1, ...]
    # o_ref: VMEM (TR, 128) f32, lanes interleaved [o0, o1, o0, o1, ...]
    x = x_ref[...]
    lane = jax.lax.broadcasted_iota(jnp.int32, x.shape, 1)
    even = (lane & 1) == 0                      # even lane -> x0 / output o0

    # De-interleave so every lane holds its own sample's (x0, x1).
    # (shift=127 ≡ -1 mod 128; both selected sides never wrap around.)
    x_prev = pltpu.roll(x, shift=1, axis=1)     # value from lane l-1
    x_next = pltpu.roll(x, shift=127, axis=1)   # value from lane l+1
    x0 = jnp.where(even, x, x_prev)
    x1 = jnp.where(even, x_next, x)

    # Layer 1: h_j = sigmoid(w1[j,0]*x0 + w1[j,1]*x1 + b1[j])  (computed per
    # lane; each sample's h is redundantly held in both lanes of its pair).
    h = []
    for j in range(3):
        z = p_ref[2 * j + 0] * x0 + p_ref[2 * j + 1] * x1 + p_ref[6 + j]
        h.append(_sigmoid(z))

    # Layer 2 with lane-alternating weights: even lanes compute output unit 0,
    # odd lanes unit 1, so the store lands directly in (B, 2) row-major order.
    z = jnp.where(even, p_ref[15], p_ref[16])                 # b2
    for j in range(3):
        z = z + jnp.where(even, p_ref[9 + j], p_ref[12 + j]) * h[j]  # w2
    o_ref[...] = _sigmoid(z)


def _round_up(n, m):
    return (n + m - 1) // m * m


def _mlp_reference(x, w1, b1, w2, b2):
    h = jax.nn.sigmoid(x @ w1.T + b1)
    return jax.nn.sigmoid(h @ w2.T + b2)


def mlp_forward(x, w1, b1, w2, b2, *, max_rows=2048, min_pallas_batch=2048):
    """x: (B, 2) f32.  w1: (3, 2), b1: (3,), w2: (2, 3), b2: (2,) (PyTorch layout)."""
    B = x.shape[0]
    x = x.astype(jnp.float32)

    # Small-batch fallback: launch overhead dominates the ~50 FLOPs of work.
    if B < min_pallas_batch:
        return _mlp_reference(x, w1.astype(jnp.float32), b1.astype(jnp.float32),
                              w2.astype(jnp.float32), b2.astype(jnp.float32))

    # Flat interleaved layout: row-major reshape (no transpose, no HBM shuffle).
    L = 2 * B                                    # flat element count
    rows_needed = (L + 127) // 128

    # Tile rows: multiple of 8 sublanes, capped for VMEM headroom (1 MiB/buffer
    # => ~4 MiB double-buffered in+out, safe even for v5e's 16 MiB scoped VMEM),
    # and sized so the grid has >= 2 steps (keeps both v7x TensorCores busy).
    TR = min(max_rows, _round_up(max((rows_needed + 1) // 2, 1), 8))
    TR = max(TR, 8)
    R = _round_up(rows_needed, TR)
    n_blocks = R // TR

    xf = x.reshape(-1)
    pad = R * 128 - L
    if pad:
        xf = jnp.pad(xf, (0, pad))
    xr = xf.reshape(R, 128)

    # Pack all parameters into one tiny SMEM-resident buffer.
    params = jnp.concatenate(
        [w1.reshape(-1), b1.reshape(-1), w2.reshape(-1), b2.reshape(-1)]
    ).astype(jnp.float32)                        # (17,)
    assert params.shape[0] == _N_PARAMS

    out_r = pl.pallas_call(
        mlp_kernel,
        out_shape=jax.ShapeDtypeStruct((R, 128), jnp.float32),
        grid=(n_blocks,),
        in_specs=[
            pl.BlockSpec(memory_space=pltpu.MemorySpace.SMEM),  # packed params
            pl.BlockSpec((TR, 128), lambda i: (i, 0)),          # interleaved x
        ],
        out_specs=pl.BlockSpec((TR, 128), lambda i: (i, 0)),
        compiler_params=pltpu.CompilerParams(
            dimension_semantics=("parallel",)),
    )(params, xr)

    # Output is already in native row-major (B, 2) order; drop padding only.
    return out_r.reshape(-1)[:L].reshape(B, 2)


if __name__ == "__main__":
    key = jax.random.PRNGKey(0)
    kx, k1, k2, k3, k4 = jax.random.split(key, 5)

    # Deterministic parameter init (PyTorch nn.Linear shapes: W is (out, in)).
    w1 = jax.random.normal(k1, (3, 2), dtype=jnp.float32) * 0.5
    b1 = jax.random.normal(k2, (3,), dtype=jnp.float32) * 0.1
    w2 = jax.random.normal(k3, (2, 3), dtype=jnp.float32) * 0.5
    b2 = jax.random.normal(k4, (2,), dtype=jnp.float32) * 0.1

    # Pallas kernel path (batch deliberately NOT a multiple of 128 to exercise
    # the padding / slice-off logic).
    B = 4100
    x = jax.random.normal(kx, (B, 2), dtype=jnp.float32)
    out = mlp_forward(x, w1, b1, w2, b2, min_pallas_batch=0)
    jax.block_until_ready(out)
    ref = _mlp_reference(x, w1, b1, w2, b2)
    assert out.shape == (B, 2)
    assert jnp.allclose(out, ref, atol=1e-4, rtol=1e-4)

    # Small-batch fallback path (pure XLA).
    xs = jax.random.normal(kx, (8, 2), dtype=jnp.float32)
    outs = mlp_forward(xs, w1, b1, w2, b2)
    jax.block_until_ready(outs)
    assert jnp.allclose(outs, _mlp_reference(xs, w1, b1, w2, b2),
                        atol=1e-4, rtol=1e-4)

    print("KERNEL_OK")
</pallas_src>

<mosaic_0001>
module attributes {stable_mosaic.version = 11 : i64} {
  func.func @mlp_kernel(%arg0: i32, %arg1: memref<17xf32, #tpu.memory_space<smem>>, %arg2: memref<40x128xf32, #tpu.memory_space<vmem>>, %arg3: memref<40x128xf32, #tpu.memory_space<vmem>>) attributes {dimension_semantics = [#tpu.dimension_semantics<parallel>], iteration_bounds = array<i64: 2>, scalar_prefetch = 0 : i64, scratch_operands = 0 : i64, tpu.core_type = #tpu.core_type<tc>, window_params = [{transform_indices = @transform_0, window_bounds = array<i64: 17>}, {transform_indices = @transform_1, window_bounds = array<i64: 40, 128>}, {transform_indices = @transform_2, window_bounds = array<i64: 40, 128>}]} {
    %c0 = arith.constant 0 : index
    %c0_0 = arith.constant 0 : index
    %0 = vector.load %arg2[%c0, %c0_0] : memref<40x128xf32, #tpu.memory_space<vmem>>, vector<40x128xf32>
    %1 = tpu.iota {dimensions = array<i32: 1>} : vector<40x128xi32>
    %c1_i32 = arith.constant 1 : i32
    %2 = vector.broadcast %c1_i32 : i32 to vector<40x128xi32>
    %3 = arith.andi %1, %2 : vector<40x128xi32>
    %c0_i32 = arith.constant 0 : i32
    %4 = vector.broadcast %c0_i32 : i32 to vector<40x128xi32>
    %5 = arith.cmpi eq, %3, %4 : vector<40x128xi32>
    %c1_i32_1 = arith.constant 1 : i32
    %6 = tpu.dynamic_rotate %0 by %c1_i32_1 dim 1 : vector<40x128xf32>, i32 -> vector<40x128xf32>
    %c127_i32 = arith.constant 127 : i32
    %7 = tpu.dynamic_rotate %0 by %c127_i32 dim 1 : vector<40x128xf32>, i32 -> vector<40x128xf32>
    %8 = arith.select %5, %0, %6 : vector<40x128xi1>, vector<40x128xf32>
    %9 = arith.select %5, %7, %0 : vector<40x128xi1>, vector<40x128xf32>
    %c0_2 = arith.constant 0 : index
    %10 = memref.load %arg1[%c0_2] : memref<17xf32, #tpu.memory_space<smem>>
    %11 = vector.broadcast %10 : f32 to vector<40x128xf32>
    %12 = arith.mulf %11, %8 : vector<40x128xf32>
    %c1 = arith.constant 1 : index
    %13 = memref.load %arg1[%c1] : memref<17xf32, #tpu.memory_space<smem>>
    %14 = vector.broadcast %13 : f32 to vector<40x128xf32>
    %15 = arith.mulf %14, %9 : vector<40x128xf32>
    %16 = arith.addf %12, %15 : vector<40x128xf32>
    %c6 = arith.constant 6 : index
    %17 = memref.load %arg1[%c6] : memref<17xf32, #tpu.memory_space<smem>>
    %18 = vector.broadcast %17 : f32 to vector<40x128xf32>
    %19 = arith.addf %16, %18 : vector<40x128xf32>
    %cst = arith.constant 5.000000e-01 : f32
    %20 = vector.broadcast %cst : f32 to vector<40x128xf32>
    %21 = arith.mulf %20, %19 : vector<40x128xf32>
    %22 = math.tanh %21 : vector<40x128xf32>
    %cst_3 = arith.constant 5.000000e-01 : f32
    %23 = vector.broadcast %cst_3 : f32 to vector<40x128xf32>
    %24 = arith.mulf %23, %22 : vector<40x128xf32>
    %cst_4 = arith.constant 5.000000e-01 : f32
    %25 = vector.broadcast %cst_4 : f32 to vector<40x128xf32>
    %26 = arith.addf %24, %25 : vector<40x128xf32>
    %c2 = arith.constant 2 : index
    %27 = memref.load %arg1[%c2] : memref<17xf32, #tpu.memory_space<smem>>
    %28 = vector.broadcast %27 : f32 to vector<40x128xf32>
    %29 = arith.mulf %28, %8 : vector<40x128xf32>
    %c3 = arith.constant 3 : index
    %30 = memref.load %arg1[%c3] : memref<17xf32, #tpu.memory_space<smem>>
    %31 = vector.broadcast %30 : f32 to vector<40x128xf32>
    %32 = arith.mulf %31, %9 : vector<40x128xf32>
    %33 = arith.addf %29, %32 : vector<40x128xf32>
    %c7 = arith.constant 7 : index
    %34 = memref.load %arg1[%c7] : memref<17xf32, #tpu.memory_space<smem>>
    %35 = vector.broadcast %34 : f32 to vector<40x128xf32>
    %36 = arith.addf %33, %35 : vector<40x128xf32>
    %cst_5 = arith.constant 5.000000e-01 : f32
    %37 = vector.broadcast %cst_5 : f32 to vector<40x128xf32>
    %38 = arith.mulf %37, %36 : vector<40x128xf32>
    %39 = math.tanh %38 : vector<40x128xf32>
    %cst_6 = arith.constant 5.000000e-01 : f32
    %40 = vector.broadcast %cst_6 : f32 to vector<40x128xf32>
    %41 = arith.mulf %40, %39 : vector<40x128xf32>
    %cst_7 = arith.constant 5.000000e-01 : f32
    %42 = vector.broadcast %cst_7 : f32 to vector<40x128xf32>
    %43 = arith.addf %41, %42 : vector<40x128xf32>
    %c4 = arith.constant 4 : index
    %44 = memref.load %arg1[%c4] : memref<17xf32, #tpu.memory_space<smem>>
    %45 = vector.broadcast %44 : f32 to vector<40x128xf32>
    %46 = arith.mulf %45, %8 : vector<40x128xf32>
    %c5 = arith.constant 5 : index
    %47 = memref.load %arg1[%c5] : memref<17xf32, #tpu.memory_space<smem>>
    %48 = vector.broadcast %47 : f32 to vector<40x128xf32>
    %49 = arith.mulf %48, %9 : vector<40x128xf32>
    %50 = arith.addf %46, %49 : vector<40x128xf32>
    %c8 = arith.constant 8 : index
    %51 = memref.load %arg1[%c8] : memref<17xf32, #tpu.memory_space<smem>>
    %52 = vector.broadcast %51 : f32 to vector<40x128xf32>
    %53 = arith.addf %50, %52 : vector<40x128xf32>
    %cst_8 = arith.constant 5.000000e-01 : f32
    %54 = vector.broadcast %cst_8 : f32 to vector<40x128xf32>
    %55 = arith.mulf %54, %53 : vector<40x128xf32>
    %56 = math.tanh %55 : vector<40x128xf32>
    %cst_9 = arith.constant 5.000000e-01 : f32
    %57 = vector.broadcast %cst_9 : f32 to vector<40x128xf32>
    %58 = arith.mulf %57, %56 : vector<40x128xf32>
    %cst_10 = arith.constant 5.000000e-01 : f32
    %59 = vector.broadcast %cst_10 : f32 to vector<40x128xf32>
    %60 = arith.addf %58, %59 : vector<40x128xf32>
    %c15 = arith.constant 15 : index
    %61 = memref.load %arg1[%c15] : memref<17xf32, #tpu.memory_space<smem>>
    %c16 = arith.constant 16 : index
    %62 = memref.load %arg1[%c16] : memref<17xf32, #tpu.memory_space<smem>>
    %63 = vector.broadcast %61 : f32 to vector<40x128xf32>
    %64 = vector.broadcast %62 : f32 to vector<40x128xf32>
    %65 = arith.select %5, %63, %64 : vector<40x128xi1>, vector<40x128xf32>
    %c9 = arith.constant 9 : index
    %66 = memref.load %arg1[%c9] : memref<17xf32, #tpu.memory_space<smem>>
    %c12 = arith.constant 12 : index
    %67 = memref.load %arg1[%c12] : memref<17xf32, #tpu.memory_space<smem>>
    %68 = vector.broadcast %66 : f32 to vector<40x128xf32>
    %69 = vector.broadcast %67 : f32 to vector<40x128xf32>
    %70 = arith.select %5, %68, %69 : vector<40x128xi1>, vector<40x128xf32>
    %71 = arith.mulf %70, %26 : vector<40x128xf32>
    %72 = arith.addf %65, %71 : vector<40x128xf32>
    %c10 = arith.constant 10 : index
    %73 = memref.load %arg1[%c10] : memref<17xf32, #tpu.memory_space<smem>>
    %c13 = arith.constant 13 : index
    %74 = memref.load %arg1[%c13] : memref<17xf32, #tpu.memory_space<smem>>
    %75 = vector.broadcast %73 : f32 to vector<40x128xf32>
    %76 = vector.broadcast %74 : f32 to vector<40x128xf32>
    %77 = arith.select %5, %75, %76 : vector<40x128xi1>, vector<40x128xf32>
    %78 = arith.mulf %77, %43 : vector<40x128xf32>
    %79 = arith.addf %72, %78 : vector<40x128xf32>
    %c11 = arith.constant 11 : index
    %80 = memref.load %arg1[%c11] : memref<17xf32, #tpu.memory_space<smem>>
    %c14 = arith.constant 14 : index
    %81 = memref.load %arg1[%c14] : memref<17xf32, #tpu.memory_space<smem>>
    %82 = vector.broadcast %80 : f32 to vector<40x128xf32>
    %83 = vector.broadcast %81 : f32 to vector<40x128xf32>
    %84 = arith.select %5, %82, %83 : vector<40x128xi1>, vector<40x128xf32>
    %85 = arith.mulf %84, %60 : vector<40x128xf32>
    %86 = arith.addf %79, %85 : vector<40x128xf32>
    %cst_11 = arith.constant 5.000000e-01 : f32
    %87 = vector.broadcast %cst_11 : f32 to vector<40x128xf32>
    %88 = arith.mulf %87, %86 : vector<40x128xf32>
    %89 = math.tanh %88 : vector<40x128xf32>
    %cst_12 = arith.constant 5.000000e-01 : f32
    %90 = vector.broadcast %cst_12 : f32 to vector<40x128xf32>
    %91 = arith.mulf %90, %89 : vector<40x128xf32>
    %cst_13 = arith.constant 5.000000e-01 : f32
    %92 = vector.broadcast %cst_13 : f32 to vector<40x128xf32>
    %93 = arith.addf %91, %92 : vector<40x128xf32>
    %c0_14 = arith.constant 0 : index
    %c0_15 = arith.constant 0 : index
    %94 = vector.load %arg3[%c0_14, %c0_15] : memref<40x128xf32, #tpu.memory_space<vmem>>, vector<40x128xf32>
    tpu.vector_store %arg3[%c0_14, %c0_15], %93 {strides = array<i32>} : memref<40x128xf32, #tpu.memory_space<vmem>>, vector<40x128xf32>,
    return
  }
  func.func @transform_0(%arg0: i32) -> i32 {
    %c0_i32 = arith.constant 0 : i32
    %c0_i32_0 = arith.constant 0 : i32
    return %c0_i32 : i32
  }
  func.func @transform_1(%arg0: i32) -> (i32, i32) {
    %c0_i32 = arith.constant 0 : i32
    %c0_i32_0 = arith.constant 0 : i32
    return %arg0, %c0_i32 : i32, i32
  }
  func.func @transform_2(%arg0: i32) -> (i32, i32) {
    %c0_i32 = arith.constant 0 : i32
    %c0_i32_0 = arith.constant 0 : i32
    return %arg0, %c0_i32 : i32, i32
  }
}

</mosaic_0001>

<bundles_post_ra>
// kernel: tpu_custom_call.1
= control target key start
LH: loop header
LB: loop body
LE: loop exit
PB: predicated region body
PF: predicated region fallthrough
CT: control target
= control target key end

     0   :  { %7 = vsyncpa [#allocation5], 0  ;;  %s1160_s0 = inlined_call_operand.hbm [shape: f32[17], index: 0, kind: input, shape index: {}]   ;;  %s1161_s1 = inlined_call_operand.hbm [shape: f32[80,128], index: 1, kind: input, shape index: {}]   ;;  %s1162_s2 = inlined_call_operand.hbm [shape: f32[80,128], index: 2, kind: output, shape index: {}]  }
   0x1   :  { %8 = vsyncpa [#allocation3], 0 }
   0x2   :  { %10 = vsyncpa [#allocation3 + $0x1], 0 }
   0x3   :  { %11 = vsyncpa [#allocation4], 0 }
   0x4   :  { %13 = vsyncpa [#allocation4 + $0x1], 0  ;;  %s799_s9 = smov 0   ;;  %s801_s10 = smov 0  }
   0x5   :  { %s803_s11 = smov 0   ;;  %s805_s12 = smov 0  }
   0x6 LB: > { %s820_s13 = sadd.s32 4294967295, %s773_s12   ;;  %s527_s14 = sadd.s32 4294967294, %s773_s12   ;;  %s773_s12 = sphi %s805_s12, %s1184_s12   ;;  %s769_s11 = sphi %s803_s11, %s1183_s11   ;;  %s765_s10 = sphi %s801_s10, %s1182_s10   ;;  %s761_s9 = sphi %s799_s9, %s1181_s9  }
   0x7   : > { %s824_s15 = sadd.s32 1, %s773_s12   ;;  %s47_s16 = sadd.s32 1, %s769_s11 }
   0x8   : > { %s44_s17 = ssub.s32 %s773_s12, %s824_s15  ;;  %p54_p0 = scmp.ne.s32.totalorder %s769_s11, %s765_s10 }
   0x9   : > { %p45_p1 = scmp.eq.s32.totalorder %s44_s17, 0  ;;  %p55_p2 = scmp.eq.s32.totalorder %s773_s12, 0 }
   0xa   : > { %p60_p3 = scmp.ne.s32.totalorder %s765_s10, %s761_s9  ;;  %p1163_p4 = scmp.eq.s32.totalorder %s820_s13, 0 }
   0xb   : > { %s836_s18 = scalar_select %p45_p1, %s769_s11, %s47_s16  }
   0xc   : > { %p838_p5 = por %p55_p2, %p54_p0  ;;  %p844_p6 = por %p1163_p4, %p60_p3 }
   0xd   : > { %p84_p7 = scmp.eq.s32.totalorder %s820_s13, 1  ;;  %p90_p8 = scmp.eq.s32.totalorder %s527_s14, 1 }
   0xe   : > { %s1167_s20 = scalar_select %p844_p6, 1, 0 }
   0xf   : > { %p528_p9 = scmp.ge.s32.totalorder %s773_s12, 1  ;;  %p97_p10 = scmp.lt.s32.totalorder %s773_s12, 3 }
  0x10   : > { %p851_p11 = por %p84_p7, %p54_p0  ;;  %p855_p12 = por %p90_p8, %p60_p3 }
  0x11   : > { %p859_p13 = pnand %p528_p9, %p97_p10  ;;  %p578_p4 = scmp.lt.s32.totalorder %s773_s12, 2 }
  0x12   : > { %s1168_s21 = scalar_select %p851_p11, 1, 0 }
  0x13   : > { %s1169_s22 = scalar_select %p855_p12, 1, 0 }
  0x14   : > { %p565_p2 = pneg %p859_p13  ;;  %s119_s24 = sand.u32 1, %s769_s11  }
  0x15   : > { %s553_s25 = smul.u32 640, %s773_s12  ;;  %p1171_p6 = scmp.eq.s32.totalorder %s820_s13, 0 }
  0x16   : > { %p873_p7 = pnand %p578_p4, %p838_p5  ;;  %s555_s27 = smul.u32 40, %s119_s24 }
  0x17   : > { %p566_p0 = pnand %p565_p2, %p1171_p6  ;;  %s660_s30 = scalar_lea.hbm %s1160_s0, 16 }
  0x18   : > { %p661_p3 = scmp.ne.s32.totalorder %s1160_s0, %s660_s30  ;;  %p667_p6 = scmp.lt.u32.totalorder %s660_s30, %s1160_s0 }
  0x19   : > { %p662_p8 = pneg %p566_p0 }
  0x1b   : > { %p663_p9 = pnand %p662_p8, %p661_p3 }
  0x1d   : > { %p664_p10 = pneg %p663_p9 }
  0x1f   : > { %p669_p4 = pnand %p667_p6, %p664_p10 }
  0x21   : > { %672 = shalt.err (!%p669_p4)
}
  0x22   : > { %s775_s7 = smov [#allocation2]   ;;  %s892_s19 = scalar_lea.hbm %s1161_s1, %s553_s25 }
  0x23   : > { %568 = dma.hbm_to_smem (!%p566_p0), %s1160_s0, 16, %s775_s7, [#allocation5]  }
  0x24   : > { %s123_s28 = scalar_lea.vmem [#allocation6], %s555_s27  ;;  %s896_s30 = scalar_lea.sflag [#allocation3], %s119_s24 }
  0x25   : > { %s130_s29 = sshll.u32 %s123_s28, 4  ;;  %s673_s3 = scalar_lea.hbm %s892_s19, 640  ;;  %s894_s29 = int_to_ptr.vmem [resolvable:$true] %s130_s29 }
  0x26   : > { %p674_p5 = scmp.ne.s32.totalorder %s892_s19, %s673_s3  ;;  %p675_p2 = pneg %p873_p7 }
  0x27   : > { %s678_s5 = scalar_lea.hbm %s1161_s1, 1280  ;;  %p679_p8 = scmp.lt.u32.totalorder %s892_s19, %s1161_s1 }
  0x28   : > { %p676_p0 = pnand %p675_p2, %p674_p5  ;;  %p680_p9 = scmp.lt.u32.totalorder %s678_s5, %s673_s3 }
  0x29   : > { %p682_p6 = scmp.lt.u32.totalorder %s673_s3, %s892_s19 }
  0x2a   : > { %p677_p3 = pneg %p676_p0  ;;  %p681_p10 = por %p680_p9, %p679_p8 }
  0x2c   : > { %p683_p4 = por %p682_p6, %p681_p10 }
  0x2e   : > { %p684_p1 = pnand %p683_p4, %p677_p3 }
  0x30   : > { %687 = shalt.err (!%p684_p1)
}
  0x31   : > { %s688_s24 = scalar_lea.vmem %s894_s29, 640  ;;  %s776_s27 = smov [#allocation6]  }
  0x32   : > { %p689_p5 = scmp.ne.s32.totalorder %s894_s29, %s688_s24  ;;  %s693_s8 = sshll.u32 %s776_s27, 4  ;;  %s694_s8 = int_to_ptr.vmem [resolvable:$false] %s693_s8 }
  0x33   : > { %s695_s14 = scalar_lea.vmem %s694_s8, 1280  ;;  %p696_p11 = scmp.lt.s32.totalorder %s894_s29, %s694_s8 }
  0x34   : > { %p691_p0 = pnand %p689_p5, %p675_p2  ;;  %p697_p8 = scmp.lt.s32.totalorder %s695_s14, %s688_s24 }
  0x36   : > { %p692_p12 = pneg %p691_p0  ;;  %p698_p9 = por %p697_p8, %p696_p11 }
  0x38   : > { %p699_p10 = pnand %p698_p9, %p692_p12 }
  0x3a   : > { %702 = shalt.err (!%p699_p10)
}
  0x3b   : > { %s777_s16 = smov 128   ;;  %s778_s17 = smov 8  }
  0x3c   : > { %572 = dma.hbm_to_vmem [thread:$0]  (!%p873_p7), %s892_s19, 640, %s894_s29, %s896_s30, %s777_s16, %s777_s16, %s778_s17  }
  0x3d   : > { %142 = sbr.rel (%p859_p13) target bundleno = 278 (0x116), region = 28  ;;  %p1173_p1 = scmp.eq.s32.totalorder (!%p859_p13), %s820_s13, 0 }
  0x44   : > { %748 = dma.done.wait (%p1173_p1), [#allocation5], 16   ;;  %p1174_p2 = pmov %p1173_p1 }
  0x45   : > { %s931_s28 = sand.u32 1, %s765_s10   ;;  %p1175_p11 = scmp.ne.s32.totalorder %s1167_s20, 0 }
  0x46   : > { %750 = vsyncadd (%p1174_p2), [#allocation5], 4294967280  ;;  %s556_s3 = smul.u32 40, %s931_s28  ;;  %s149_s25 = scalar_lea.sflag [#allocation3], %s931_s28 }
  0x48   : > { %s152_s26 = scalar_lea.vmem [#allocation6], %s556_s3 }
  0x49   : > { %752 = dma.done.wait (%p1175_p11), %s149_s25, 640  }
  0x4a   : > { %754 = vsyncadd (%p1175_p11), %s149_s25, 4294966656 }
  0x4b   : > { %157 = sfence }
  0x4c   : > { %v941_v0 = vld [vmem:[%s152_s26 + $0x10] sm:$0xff]  ;;  %v943_v1 = vld [vmem:[%s152_s26] sm:$0xff]  ;;  %s779_s23 = smov 1   ;;  %v947_v2 = vld [vmem:[%s152_s26 + $0x18] sm:$0xff]  ;;  %s780_s20 = smov 127   ;;  %v181_v5 = vlaneseq }
  0x4d   : > { %189 = vrot.lane.b32.xlu1 %v941_v0, %s779_s23  ;;  %185 = vrot.lane.b32.xlu0 %v943_v1, %s779_s23  ;;  %v949_v3 = vld [vmem:[%s152_s26 + $0x8] sm:$0xff]  ;;  %v953_v4 = vld [vmem:[%s152_s26 + $0x20] sm:$0xff]  ;;  %s215_s19 = sld [smem:[#allocation2]]  ;;  %s536_s29 = sld [smem:[#allocation2 + $0x2]] }
  0x4e   : > { %s539_s30 = sld [smem:[#allocation2 + $0x4]]  ;;  %s534_s4 = sld [smem:[#allocation2 + $0x1]]  ;;  %v182_v6 = vand.u32 127, %v181_v5 }
  0x4f   : > { %s535_s5 = sld [smem:[#allocation2 + $0x6]]  ;;  %s537_s6 = sld [smem:[#allocation2 + $0x3]] }
  0x50   : > { %s961_s7 = sld [smem:[#allocation2 + $0xf]]  ;;  %s963_s24 = sld [smem:[#allocation2 + $0x10]]  ;;  %v183_v7 = vand.u32 1, %v182_v6 }
  0x51   : > { %191 = vrot.lane.b32.xlu1 %v947_v2, %s779_s23  ;;  %187 = vrot.lane.b32.xlu0 %v949_v3, %s779_s23  ;;  %s965_s27 = sld [smem:[#allocation2 + $0x9]]  ;;  %s967_s8 = sld [smem:[#allocation2 + $0xc]] }
  0x52   : > { %s969_s14 = sld [smem:[#allocation2 + $0xa]]  ;;  %s971_s16 = sld [smem:[#allocation2 + $0xd]]  ;;  %vm975_vm0 = vcmp.eq.s32.totalorder %v183_v7, 0 }
  0x53   : > { %s538_s17 = sld [smem:[#allocation2 + $0x7]]  ;;  %s540_s25 = sld [smem:[#allocation2 + $0x5]]  ;;  %v216_v11 = vstv %s215_s19  ;;  %v262_v12 = vstv %s536_s29 }
  0x54   : > { %s541_s26 = sld [smem:[#allocation2 + $0x8]]  ;;  %v308_v13 = vstv %s539_s30  ;;  %v979_v14 = vstv %s534_s4  ;;  %s173_s19 = scalar_lea.vmem [#allocation7], %s556_s3 }
  0x55   : > { %195 = vrot.lane.b32.xlu1 %v943_v1, %s780_s20  ;;  %193 = vrot.lane.b32.xlu0 %v953_v4, %s779_s23  ;;  %s973_s23 = sld [smem:[#allocation2 + $0xb]]  ;;  %v988_v22 = vstv %s535_s5  ;;  %v995_v26 = vstv %s537_s6  ;;  %s554_s29 = smul.u32 640, %s820_s13 }
  0x56   : > { %v355_v15 = vstv %s961_s7  ;;  %v356_v16 = vstv %s963_s24  ;;  %s442_s30 = sshll.u32 %s173_s19, 4  ;;  %s429_s6 = scalar_lea.sflag [#allocation4], %s931_s28  ;;  %s1116_s30 = int_to_ptr.vmem [resolvable:$true] %s442_s30 }
  0x57   : > { %v360_v17 = vstv %s965_s27  ;;  %v361_v18 = vstv %s967_s8  ;;  %v1008_v31 = vsel %vm975_vm0, %v355_v15, %v356_v16  ;;  %s1114_s5 = scalar_lea.hbm %s1162_s2, %s554_s29  ;;  %s703_s7 = scalar_lea.vmem %s1116_s30, 640 }
  0x58   : > { %v375_v23 = vstv %s969_s14  ;;  %v376_v24 = vstv %s971_s16  ;;  %v1012_v32 = vsel %vm975_vm0, %v360_v17, %v361_v18  ;;  %p704_p12 = scmp.ne.s32.totalorder %s1116_s30, %s703_s7  ;;  %p1178_p13 = scmp.ne.s32.totalorder %s1168_s21, 0 }
  0x59   : > { %199 = vrot.lane.b32.xlu1 %v941_v0, %s780_s20  ;;  %197 = vrot.lane.b32.xlu0 %v949_v3, %s780_s20  ;;  %v997_v27 = vstv %s538_s17  ;;  %v999_v28 = vstv %s540_s25  ;;  %v1016_v35 = vsel %vm975_vm0, %v375_v23, %v376_v24  ;;  %s781_s13 = smov [#allocation7]  }
  0x5a   : > { %v1004_v30 = vstv %s541_s26  ;;  %p705_p7 = pnand %p704_p12, %p1178_p13  ;;  %s707_s24 = sshll.u32 %s781_s13, 4  ;;  %s708_s24 = int_to_ptr.vmem [resolvable:$false] %s707_s24 }
  0x5b   : > { %v390_v36 = vstv %s973_s23  ;;  %s709_s27 = scalar_lea.vmem %s708_s24, 1280  ;;  %p710_p6 = scmp.lt.s32.totalorder %s1116_s30, %s708_s24 }
  0x5c   : > { %p706_p3 = pneg %p705_p7  ;;  %p711_p4 = scmp.lt.s32.totalorder %s709_s27, %s703_s7 }
  0x5d   : > { %203 = vrot.lane.b32.xlu1 %v953_v4, %s780_s20  ;;  %201 = vrot.lane.b32.xlu0 %v947_v2, %s780_s20  ;;  %s1059_s20 = sld [smem:[#allocation2 + $0xe]] }
  0x5e   : > { %p712_p5 = por %p711_p4, %p710_p6 }
  0x60   : > { %p713_p0 = pnand %p712_p5, %p706_p3 }
  0xbf   : > { %v190_v8 = vpop.permute.xlu1 %189  ;;  %v186_v9 = vpop.permute.xlu0 %185 }
  0xc0   : > { %v207_v19 = vsel %vm975_vm0, %v941_v0, %v190_v8  ;;  %v205_v25 = vsel %vm975_vm0, %v943_v1, %v186_v9 }
  0xc1   : > { %v219_v33 = vmul.f32 %v216_v11, %v207_v19  ;;  %v265_v34 = vmul.f32 %v262_v12, %v207_v19  ;;  %v311_v37 = vmul.f32 %v308_v13, %v207_v19  ;;  %v217_v38 = vmul.f32 %v216_v11, %v205_v25 }
  0xc2   : > { %v263_v39 = vmul.f32 %v262_v12, %v205_v25  ;;  %v309_v43 = vmul.f32 %v308_v13, %v205_v25 }
  0xc3   : > { %v192_v20 = vpop.permute.xlu1 %191  ;;  %v188_v21 = vpop.permute.xlu0 %187 }
  0xc4   : > { %v208_v29 = vsel %vm975_vm0, %v947_v2, %v192_v20  ;;  %v206_v40 = vsel %vm975_vm0, %v949_v3, %v188_v21 }
  0xc5   : > { %v1022_v44 = vmul.f32 %v216_v11, %v208_v29  ;;  %v1030_v47 = vmul.f32 %v262_v12, %v208_v29  ;;  %v1035_v51 = vmul.f32 %v308_v13, %v208_v29  ;;  %v218_v52 = vmul.f32 %v216_v11, %v206_v40 }
  0xc6   : > { %v264_v53 = vmul.f32 %v262_v12, %v206_v40  ;;  %v310_v54 = vmul.f32 %v308_v13, %v206_v40 }
  0xc7   : > { %v196_v41 = vpop.permute.xlu1 %195  ;;  %v194_v42 = vpop.permute.xlu0 %193 }
  0xc8   : > { %v210_v45 = vsel %vm975_vm0, %v196_v41, %v943_v1  ;;  %v209_v46 = vsel %vm975_vm0, %v953_v4, %v194_v42 }
  0xc9   : > { %v224_v48 = vmul.f32 %v979_v14, %v210_v45  ;;  %v270_v49 = vmul.f32 %v995_v26, %v210_v45  ;;  %v316_v50 = vmul.f32 %v999_v28, %v210_v45  ;;  %v221_v58 = vmul.f32 %v216_v11, %v209_v46 }
  0xca   : > { %v267_v61 = vmul.f32 %v262_v12, %v209_v46  ;;  %v313_v62 = vmul.f32 %v308_v13, %v209_v46 }
  0xcb   : > { %v229_v55 = vadd.f32 %v224_v48, %v217_v38  ;;  %v275_v56 = vadd.f32 %v270_v49, %v263_v39  ;;  %v321_v57 = vadd.f32 %v316_v50, %v309_v43  ;;  %v200_v59 = vpop.permute.xlu1 %199  ;;  %v198_v60 = vpop.permute.xlu0 %197 }
  0xcc   : > { %v212_v63 = vsel %vm975_vm0, %v200_v59, %v941_v0  ;;  %v211_v1 = vsel %vm975_vm0, %v198_v60, %v949_v3 }
  0xcd   : > { %v236_v5 = vadd.f32 %v988_v22, %v229_v55  ;;  %v282_v6 = vadd.f32 %v997_v27, %v275_v56  ;;  %v328_v7 = vadd.f32 %v1004_v30, %v321_v57  ;;  %v226_v8 = vmul.f32 %v979_v14, %v212_v63 }
  0xce   : > { %v272_v9 = vmul.f32 %v995_v26, %v212_v63  ;;  %v318_v11 = vmul.f32 %v999_v28, %v212_v63  ;;  %v225_v12 = vmul.f32 %v979_v14, %v211_v1  ;;  %v271_v0 = vmul.f32 %v995_v26, %v211_v1 }
  0xcf   : > { %v241_v13 = vmul.f32 0.5, %v236_v5  ;;  %v287_v15 = vmul.f32 0.5, %v282_v6  ;;  %v333_v16 = vmul.f32 0.5, %v328_v7  ;;  %v231_v3 = vadd.f32 %v226_v8, %v219_v33  ;;  %v204_v17 = vpop.permute.xlu1 %203  ;;  %v202_v40 = vpop.permute.xlu0 %201 }
  0xd0   : > { %v277_v18 = vadd.f32 %v272_v9, %v265_v34  ;;  %v323_v19 = vadd.f32 %v318_v11, %v311_v37  ;;  %v230_v20 = vadd.f32 %v225_v12, %v218_v52  ;;  %v276_v21 = vadd.f32 %v271_v0, %v264_v53 }
  0xd1   : > { %620 = vtanh.f32 %v241_v13  ;;  %v238_v23 = vadd.f32 %v988_v22, %v231_v3  ;;  %v317_v24 = vmul.f32 %v999_v28, %v211_v1  ;;  %v214_v25 = vsel %vm975_vm0, %v204_v17, %v953_v4 }
  0xd2   : > { %622 = vtanh.f32 %v287_v15  ;;  %v284_v29 = vadd.f32 %v997_v27, %v277_v18  ;;  %v330_v38 = vadd.f32 %v1004_v30, %v323_v19  ;;  %v237_v33 = vadd.f32 %v988_v22, %v230_v20 }
  0xd3   : > { %624 = vtanh.f32 %v333_v16  ;;  %v243_v34 = vmul.f32 0.5, %v238_v23  ;;  %v283_v37 = vadd.f32 %v997_v27, %v276_v21  ;;  %v322_v39 = vadd.f32 %v317_v24, %v310_v54 }
  0xd4   : > { %v289_v41 = vmul.f32 0.5, %v284_v29  ;;  %v335_v42 = vmul.f32 0.5, %v330_v38  ;;  %v242_v43 = vmul.f32 0.5, %v237_v33  ;;  %v228_v4 = vmul.f32 %v979_v14, %v214_v25 }
  0xd5   : > { %626 = vtanh.f32 %v243_v34  ;;  %v288_v45 = vmul.f32 0.5, %v283_v37  ;;  %v329_v46 = vadd.f32 %v1004_v30, %v322_v39  ;;  %v274_v48 = vmul.f32 %v995_v26, %v214_v25 }
  0xd6   : > { %628 = vtanh.f32 %v289_v41  ;;  %v233_v49 = vadd.f32 %v228_v4, %v221_v58  ;;  %v320_v50 = vmul.f32 %v999_v28, %v214_v25  ;;  %v213_v52 = vsel %vm975_vm0, %v202_v40, %v947_v2 }
  0xd7   : > { %630 = vtanh.f32 %v335_v42  ;;  %v334_v53 = vmul.f32 0.5, %v329_v46  ;;  %v279_v54 = vadd.f32 %v274_v48, %v267_v61  ;;  %v227_v55 = vmul.f32 %v979_v14, %v213_v52 }
  0xd8   : > { %632 = vtanh.f32 %v242_v43  ;;  %v240_v56 = vadd.f32 %v988_v22, %v233_v49  ;;  %v325_v57 = vadd.f32 %v320_v50, %v313_v62  ;;  %v273_v59 = vmul.f32 %v995_v26, %v213_v52 }
  0xd9   : > { %634 = vtanh.f32 %v288_v45  ;;  %v286_v58 = vadd.f32 %v997_v27, %v279_v54  ;;  %v232_v60 = vadd.f32 %v227_v55, %v1022_v44  ;;  %v319_v63 = vmul.f32 %v999_v28, %v213_v52 }
  0xda   : > { %636 = vtanh.f32 %v334_v53  ;;  %v245_v2 = vmul.f32 0.5, %v240_v56  ;;  %v332_v1 = vadd.f32 %v1004_v30, %v325_v57  ;;  %v278_v61 = vadd.f32 %v273_v59, %v1030_v47 }
  0xdb   : > { %v621_v14 = vpop.eup %620  ;;  %v391_v5 = vstv %s1059_s20  ;;  %v291_v6 = vmul.f32 0.5, %v286_v58  ;;  %v239_v62 = vadd.f32 %v988_v22, %v232_v60  ;;  %v324_v26 = vadd.f32 %v319_v63, %v1035_v51 }
  0xdc   : > { %v623_v7 = vpop.eup %622  ;;  %v251_v8 = vmul.f32 0.5, %v621_v14  ;;  %638 = vtanh.f32 %v245_v2  ;;  %v337_v44 = vmul.f32 0.5, %v332_v1  ;;  %v285_v28 = vadd.f32 %v997_v27, %v278_v61 }
  0xdd   : > { %v625_v9 = vpop.eup %624  ;;  %v297_v11 = vmul.f32 0.5, %v623_v7  ;;  %640 = vtanh.f32 %v291_v6  ;;  %v244_v12 = vmul.f32 0.5, %v239_v62  ;;  %v331_v47 = vadd.f32 %v1004_v30, %v324_v26 }
  0xde   : > { %v256_v0 = vadd.f32 0.5, %v251_v8  ;;  %v343_v13 = vmul.f32 0.5, %v625_v9  ;;  %642 = vtanh.f32 %v337_v44  ;;  %v290_v15 = vmul.f32 0.5, %v285_v28 }
  0xdf   : > { %v627_v22 = vpop.eup %626  ;;  %v1086_v51 = vsel %vm975_vm0, %v390_v36, %v391_v5  ;;  %v302_v16 = vadd.f32 0.5, %v297_v11  ;;  %644 = vtanh.f32 %v244_v12  ;;  %v336_v3 = vmul.f32 0.5, %v331_v47 }
  0xe0   : > { %v629_v27 = vpop.eup %628  ;;  %v348_v17 = vadd.f32 0.5, %v343_v13  ;;  %v363_v18 = vmul.f32 %v1012_v32, %v256_v0  ;;  %v253_v19 = vmul.f32 0.5, %v627_v22  ;;  %646 = vtanh.f32 %v290_v15 }
  0xe1   : > { %v631_v30 = vpop.eup %630  ;;  %v299_v20 = vmul.f32 0.5, %v629_v27  ;;  %648 = vtanh.f32 %v336_v3  ;;  %v378_v24 = vmul.f32 %v1016_v35, %v302_v16 }
  0xe2   : > { %v633_v21 = vpop.eup %632  ;;  %v368_v23 = vadd.f32 %v363_v18, %v1008_v31  ;;  %v258_v10 = vadd.f32 0.5, %v253_v19  ;;  %v345_v36 = vmul.f32 0.5, %v631_v30  ;;  %v393_v29 = vmul.f32 %v1086_v51, %v348_v17 }
  0xe3   : > { %v635_v25 = vpop.eup %634  ;;  %v304_v38 = vadd.f32 0.5, %v299_v20  ;;  %v252_v33 = vmul.f32 0.5, %v633_v21 }
  0xe4   : > { %v637_v34 = vpop.eup %636  ;;  %v383_v37 = vadd.f32 %v378_v24, %v368_v23  ;;  %v350_v39 = vadd.f32 0.5, %v345_v36  ;;  %v365_v40 = vmul.f32 %v1012_v32, %v258_v10  ;;  %v298_v41 = vmul.f32 0.5, %v635_v25 }
  0xe5   : > { %v257_v42 = vadd.f32 0.5, %v252_v33  ;;  %v344_v43 = vmul.f32 0.5, %v637_v34  ;;  %v380_v48 = vmul.f32 %v1016_v35, %v304_v38 }
  0xe6   : > { %v639_v4 = vpop.eup %638  ;;  %v398_v45 = vadd.f32 %v393_v29, %v383_v37  ;;  %v370_v46 = vadd.f32 %v365_v40, %v1008_v31  ;;  %v303_v49 = vadd.f32 0.5, %v298_v41  ;;  %v395_v52 = vmul.f32 %v1086_v51, %v350_v39 }
  0xe7   : > { %v641_v50 = vpop.eup %640  ;;  %v349_v53 = vadd.f32 0.5, %v344_v43  ;;  %v364_v54 = vmul.f32 %v1012_v32, %v257_v42  ;;  %v255_v55 = vmul.f32 0.5, %v639_v4 }
  0xe8   : > { %v643_v56 = vpop.eup %642  ;;  %v403_v57 = vmul.f32 0.5, %v398_v45  ;;  %v385_v59 = vadd.f32 %v380_v48, %v370_v46  ;;  %v379_v58 = vmul.f32 %v1016_v35, %v303_v49  ;;  %v301_v60 = vmul.f32 0.5, %v641_v50 }
  0xe9   : > { %v645_v63 = vpop.eup %644  ;;  %v369_v2 = vadd.f32 %v364_v54, %v1008_v31  ;;  %v394_v1 = vmul.f32 %v1086_v51, %v349_v53  ;;  %v260_v61 = vadd.f32 0.5, %v255_v55  ;;  %v347_v14 = vmul.f32 0.5, %v643_v56 }
  0xea   : > { %v647_v5 = vpop.eup %646  ;;  %650 = vtanh.f32 %v403_v57  ;;  %v400_v6 = vadd.f32 %v395_v52, %v385_v59  ;;  %v306_v62 = vadd.f32 0.5, %v301_v60  ;;  %v254_v26 = vmul.f32 0.5, %v645_v63 }
  0xeb   : > { %v649_v7 = vpop.eup %648  ;;  %v384_v8 = vadd.f32 %v379_v58, %v369_v2  ;;  %v352_v44 = vadd.f32 0.5, %v347_v14  ;;  %v367_v28 = vmul.f32 %v1012_v32, %v260_v61  ;;  %v300_v9 = vmul.f32 0.5, %v647_v5 }
  0xec   : > { %v405_v11 = vmul.f32 0.5, %v400_v6  ;;  %v259_v12 = vadd.f32 0.5, %v254_v26  ;;  %v346_v47 = vmul.f32 0.5, %v649_v7  ;;  %v382_v15 = vmul.f32 %v1016_v35, %v306_v62 }
  0xed   : > { %v399_v0 = vadd.f32 %v394_v1, %v384_v8  ;;  %v372_v13 = vadd.f32 %v367_v28, %v1008_v31  ;;  %v305_v22 = vadd.f32 0.5, %v300_v9  ;;  %v397_v18 = vmul.f32 %v1086_v51, %v352_v44 }
  0xee   : > { %652 = vtanh.f32 %v405_v11  ;;  %v351_v16 = vadd.f32 0.5, %v346_v47  ;;  %v366_v3 = vmul.f32 %v1012_v32, %v259_v12 }
  0xef   : > { %v404_v27 = vmul.f32 0.5, %v399_v0  ;;  %v387_v17 = vadd.f32 %v382_v15, %v372_v13  ;;  %v381_v30 = vmul.f32 %v1016_v35, %v305_v22 }
  0xf0   : > { %v371_v19 = vadd.f32 %v366_v3, %v1008_v31  ;;  %v396_v23 = vmul.f32 %v1086_v51, %v351_v16 }
  0xf1   : > { %654 = vtanh.f32 %v404_v27  ;;  %v402_v20 = vadd.f32 %v397_v18, %v387_v17 }
  0xf2   : > { %v386_v21 = vadd.f32 %v381_v30, %v371_v19 }
  0xf3   : > { %v407_v24 = vmul.f32 0.5, %v402_v20 }
  0xf4   : > { %v651_v10 = vpop.eup %650  ;;  %v401_v36 = vadd.f32 %v396_v23, %v386_v21 }
  0xf5   : > { %v413_v25 = vmul.f32 0.5, %v651_v10  ;;  %656 = vtanh.f32 %v407_v24 }
  0xf6   : > { %v406_v32 = vmul.f32 0.5, %v401_v36 }
  0xf7   : > { %v418_v29 = vadd.f32 0.5, %v413_v25 }
  0xf8   : > { %v653_v38 = vpop.eup %652  ;;  %658 = vtanh.f32 %v406_v32 }
  0xf9   : > { %423 = vst [vmem:[%s173_s19] sm:$0xff] %v418_v29  ;;  %v415_v31 = vmul.f32 0.5, %v653_v38 }
  0xfb   : > { %v655_v35 = vpop.eup %654  ;;  %v420_v33 = vadd.f32 0.5, %v415_v31 }
  0xfc   : > { %v414_v34 = vmul.f32 0.5, %v655_v35 }
  0xfd   : > { %425 = vst [vmem:[%s173_s19 + $0x10] sm:$0xff] %v420_v33 }
  0xfe   : > { %v419_v51 = vadd.f32 0.5, %v414_v34 }
  0xff   : > { %v657_v37 = vpop.eup %656 }
 0x100   : > { %424 = vst [vmem:[%s173_s19 + $0x8] sm:$0xff] %v419_v51  ;;  %v417_v39 = vmul.f32 0.5, %v657_v37 }
 0x102   : > { %v659_v40 = vpop.eup %658  ;;  %v422_v41 = vadd.f32 0.5, %v417_v39 }
 0x103   : > { %v416_v42 = vmul.f32 0.5, %v659_v40 }
 0x104   : > { %427 = vst [vmem:[%s173_s19 + $0x20] sm:$0xff] %v422_v41 }
 0x105   : > { %v421_v43 = vadd.f32 0.5, %v416_v42 }
 0x107   : > { %426 = vst [vmem:[%s173_s19 + $0x18] sm:$0xff] %v421_v43 }
 0x108   : > { %716 = shalt.err (!%p713_p0)
}
 0x109   : > { %s717_s8 = scalar_lea.hbm %s1114_s5, 640  ;;  %s721_s17 = scalar_lea.hbm %s1162_s2, 1280 }
 0x10a   : > { %p718_p8 = scmp.ne.s32.totalorder %s1114_s5, %s717_s8  ;;  %p722_p1 = scmp.lt.u32.totalorder %s1114_s5, %s1162_s2 }
 0x10b   : > { %p723_p2 = scmp.lt.u32.totalorder %s721_s17, %s717_s8  ;;  %p725_p12 = scmp.lt.u32.totalorder %s717_s8, %s1114_s5 }
 0x10c   : > { %p719_p9 = pnand %p718_p8, %p1178_p13 }
 0x10d   : > { %p724_p11 = por %p723_p2, %p722_p1 }
 0x10e   : > { %p720_p10 = pneg %p719_p9 }
 0x10f   : > { %p726_p7 = por %p725_p12, %p724_p11 }
 0x111   : > { %p727_p3 = pnand %p726_p7, %p720_p10 }
 0x113   : > { %730 = shalt.err (!%p727_p3)
}
 0x114   : > { %s782_s23 = smov 128   ;;  %s783_s20 = smov 8  }
 0x115   : > { %563 = dma.vmem_to_hbm [thread:$0]  (%p1178_p13), %s1116_s30, 640, %s1114_s5, %s429_s6, %s782_s23, %s782_s23, %s783_s20  }
 0x116 PF: > { %s457_s19 = sand.u32 1, %s761_s9   ;;  %p1179_p6 = scmp.ne.s32.totalorder %s1169_s22, 0 }
 0x117   : > { %p1180_p4 = scmp.ge.s32.totalorder %s773_s12, 2  ;;  %s458_s29 = scalar_lea.sflag [#allocation4], %s457_s19 }
 0x119   : > { %p574_p5 = pnand %p1180_p4, %p1179_p6 }
 0x11b   : > { %756 = dma.done.wait (!%p574_p5), %s458_s29, 640  }
 0x11c   : > { %758 = vsyncadd (!%p574_p5), %s458_s29, 4294966656  ;;  %p16_p0 = scmp.ge.s32.totalorder %s824_s15, 4   ;;  %s1181_s9 = smov %s765_s10 }
 0x11d   : > { %s1182_s10 = smov %s769_s11  ;;  %s1183_s11 = smov %s836_s18 }
 0x11e   : > { %s1184_s12 = smov %s824_s15  ;;  %18 = sbr.rel (!%p16_p0) target bundleno = 6 (0x6), region = 78 }
 0x125   :  { %463 = vsyncpa [#allocation3], 1 }
 0x126   :  { %465 = vsyncpa [#allocation3 + $0x1], 1 }
 0x127   :  { %466 = vsyncpa [#allocation4], 1 }
 0x128   :  { %468 = vsyncpa [#allocation4 + $0x1], 1 }
 0x129   :  { %469 = vsyncpa [#allocation5], 1 }
 0x12a   :  { %471 = vsyncpa [#allocation5 + $0x1], 1 }

</bundles_post_ra>
